<compile_context>
chip_gen: v5e
topology: v5e:2x2
jax: 0.10.0
libtpu: 0.0.40
codegen_flags: <defaults>
</compile_context>

<pallas_src>
import functools

import jax
import jax.numpy as jnp
import numpy as np
from jax.experimental import pallas as pl
from jax.experimental.pallas import tpu as pltpu


# ----------------------------------------------------------------------------
# init-time parameter preparation (runs once, outside the hot path)
# ----------------------------------------------------------------------------

def _conv_toeplitz(w_oihw, w_in, out_cols, pad):
    """Per-kh block-Toeplitz matrices for a 3x3 stride-1 conv on a (H, W*Cin) slab.

    Returns T with shape (3, w_in*Cin, len(out_cols)*Cout) such that
      T[kh, p*Cin + c, jj*Cout + o] = w[o, c, kh, p - out_cols[jj] + pad]
    (zero outside the kernel support / outside the padded width)."""
    cout, cin, kh_, kw_ = w_oihw.shape
    sel = np.zeros((kw_, w_in, len(out_cols)), np.float32)
    for kw in range(kw_):
        for jj, j in enumerate(out_cols):
            p = j + kw - pad
            if 0 <= p < w_in:
                sel[kw, p, jj] = 1.0
    t = jnp.einsum('wpj,ochw->hpcjo', jnp.asarray(sel), w_oihw)
    return t.reshape(kh_, w_in * cin, len(out_cols) * cout)


def init_params(key, in_channels, channels, hidden_dims, num_classes, init_std=0.02):
    """Raw torch-layout parameters (mirrors init_weights: W ~ N(0, std), b = 0.01)."""
    ks = jax.random.split(key, 4)
    return {
        "conv1_w": init_std * jax.random.normal(ks[0], (channels[0], in_channels, 3, 3), jnp.float32),
        "conv1_b": jnp.full((channels[0],), 0.01, jnp.float32),
        "conv2_w": init_std * jax.random.normal(ks[1], (channels[1], channels[0], 3, 3), jnp.float32),
        "conv2_b": jnp.full((channels[1],), 0.01, jnp.float32),
        "fc1_w": init_std * jax.random.normal(ks[2], (hidden_dims[1], hidden_dims[0]), jnp.float32),
        "fc1_b": jnp.full((hidden_dims[1],), 0.01, jnp.float32),
        "fc2_w": init_std * jax.random.normal(ks[3], (num_classes, hidden_dims[1]), jnp.float32),
        "fc2_b": jnp.full((num_classes,), 0.01, jnp.float32),
    }


def prepare_params(params, in_hw):
    """Precompute kernel-ready weights (Toeplitz conv weights, permuted FC weights)."""
    H, W = in_hw
    c1, cin = params["conv1_w"].shape[:2]
    c2 = params["conv2_w"].shape[0]
    Ho1, Wo1 = H - 2, W - 2                 # conv1 (valid)
    Hp1, Wp1 = Ho1 // 2, Wo1 // 2           # pool1 (floor)
    Ho2, Wo2 = Hp1, Wp1                     # conv2 (pad=1, stride=1)
    Hp2, Wp2 = Ho2 // 2, Wo2 // 2           # pool2 (floor)
    hidden1 = params["fc1_w"].shape[0]
    assert params["fc1_w"].shape[1] == c2 * Hp2 * Wp2, \
        "hidden_dims[0] must equal channels[-1] * pooled_h * pooled_w"

    even1 = list(range(0, 2 * Wp1, 2)); odd1 = list(range(1, 2 * Wp1, 2))
    even2 = list(range(0, 2 * Wp2, 2)); odd2 = list(range(1, 2 * Wp2, 2))

    kp = {
        # conv1: valid conv, even/odd output columns (W half of the 2x2 pool)
        "w1e": _conv_toeplitz(params["conv1_w"], W, even1, pad=0),     # (3, W*cin,  Wp1*c1)
        "w1o": _conv_toeplitz(params["conv1_w"], W, odd1,  pad=0),
        "b1":  jnp.tile(params["conv1_b"], Wp1)[None, :],              # (1, Wp1*c1)
        # conv2: pad=1 in W baked into the Toeplitz weights; only pooled columns kept
        "w2e": _conv_toeplitz(params["conv2_w"], Wp1, even2, pad=1),   # (3, Wp1*c1, Wp2*c2)
        "w2o": _conv_toeplitz(params["conv2_w"], Wp1, odd2,  pad=1),
        "b2":  jnp.tile(params["conv2_b"], Wp2)[None, :],              # (1, Wp2*c2)
        # fc1: permute columns from torch (c,h,w) flatten order to kernel (h,w,c) order
        "wf1": (params["fc1_w"].reshape(hidden1, c2, Hp2, Wp2)
                .transpose(2, 3, 1, 0).reshape(Hp2 * Wp2 * c2, hidden1)),
        "bf1": params["fc1_b"][None, :],
        "wf2": params["fc2_w"].T,
        "bf2": params["fc2_b"][None, :],
    }
    dims = dict(H=H, W=W, Cin=cin, Ho1=Ho1, Hp1=Hp1, Ho2=Ho2, Hp2=Hp2, wblk=Wp2 * c2)
    return kp, dims


# ----------------------------------------------------------------------------
# fused Pallas kernel: conv1 -> relu -> pool1 -> conv2 -> relu -> pool2 -> fc1 -> fc2
# ----------------------------------------------------------------------------

def _row_select(rows, cols, offset, step=1):
    # S[r, c] = 1.0 where c == step*r + offset else 0.0  (exact 0/1 selector, VPU-built)
    r = jax.lax.broadcasted_iota(jnp.int32, (rows, cols), 0)
    c = jax.lax.broadcasted_iota(jnp.int32, (rows, cols), 1)
    return jnp.where(c == step * r + offset, 1.0, 0.0)


def _fused_cnn_kernel(x_ref, w1e_ref, w1o_ref, b1_ref,
                      w2e_ref, w2o_ref, b2_ref,
                      wf1_ref, bf1_ref, wf2_ref, bf2_ref,
                      o_ref, *, dims):
    Ho1, Hp1 = dims["Ho1"], dims["Hp1"]
    Ho2, Hp2 = dims["Ho2"], dims["Hp2"]
    wblk = dims["wblk"]
    f32 = jnp.float32

    x = x_ref[...]                                            # (H, W*Cin) one image

    # ---- conv1 (3x3 valid) + bias + ReLU + W-half of the 2x2 pool --------------
    ce = b1_ref[...]
    co = b1_ref[...]
    for kh in range(3):
        lhs = x[kh:kh + Ho1, :]                               # row-shifted view
        ce = ce + jnp.dot(lhs, w1e_ref[kh], preferred_element_type=f32)
        co = co + jnp.dot(lhs, w1o_ref[kh], preferred_element_type=f32)
    wmax1 = jnp.maximum(jnp.maximum(ce, 0.0), jnp.maximum(co, 0.0))   # (Ho1, Wp1*C1)

    # H-half of the pool: exact even/odd row selection via 0/1 matmuls
    se1 = _row_select(Hp1, Ho1, 0, 2)
    so1 = _row_select(Hp1, Ho1, 1, 2)
    pooled1 = jnp.maximum(jnp.dot(se1, wmax1, preferred_element_type=f32),
                          jnp.dot(so1, wmax1, preferred_element_type=f32))  # (Hp1, Wp1*C1)

    # ---- conv2 (3x3, pad=1): H zero-padding via shift matrices ------------------
    sdn = _row_select(Ho2, Hp1, -1)          # row i <- pooled1[i-1], row 0 = 0
    sup = _row_select(Ho2, Hp1, 1)           # row i <- pooled1[i+1], last row = 0
    lhs_by_kh = (jnp.dot(sdn, pooled1, preferred_element_type=f32),
                 pooled1,
                 jnp.dot(sup, pooled1, preferred_element_type=f32))
    ze = b2_ref[...]
    zo = b2_ref[...]
    for kh in range(3):
        ze = ze + jnp.dot(lhs_by_kh[kh], w2e_ref[kh], preferred_element_type=f32)
        zo = zo + jnp.dot(lhs_by_kh[kh], w2o_ref[kh], preferred_element_type=f32)
    wmax2 = jnp.maximum(jnp.maximum(ze, 0.0), jnp.maximum(zo, 0.0))   # (Ho2, Wp2*C2)

    se2 = _row_select(Hp2, Ho2, 0, 2)
    so2 = _row_select(Hp2, Ho2, 1, 2)
    pooled2 = jnp.maximum(jnp.dot(se2, wmax2, preferred_element_type=f32),
                          jnp.dot(so2, wmax2, preferred_element_type=f32))  # (Hp2, Wp2*C2)

    # ---- classifier: Linear -> Linear (no activation in between) ----------------
    h = bf1_ref[...]
    for r in range(Hp2):
        h = h + jnp.dot(pooled2[r:r + 1, :],
                        wf1_ref[pl.ds(r * wblk, wblk), :],
                        preferred_element_type=f32)
    out = jnp.dot(h, wf2_ref[...], preferred_element_type=f32) + bf2_ref[...]
    o_ref[...] = out.astype(o_ref.dtype)


def _const_spec(a):
    nd = a.ndim
    return pl.BlockSpec(a.shape, lambda n, nd=nd: (0,) * nd)


def cnn_forward(x_nchw, kp, dims):
    n = x_nchw.shape[0]
    H, W, Cin = dims["H"], dims["W"], dims["Cin"]
    ncls = kp["bf2"].shape[-1]

    # NCHW -> per-image channels-last slab (N, H, W*Cin): the only XLA glue op.
    x2 = jnp.transpose(x_nchw, (0, 2, 3, 1)).reshape(n, H, W * Cin)

    weights = (kp["w1e"], kp["w1o"], kp["b1"],
               kp["w2e"], kp["w2o"], kp["b2"],
               kp["wf1"], kp["bf1"], kp["wf2"], kp["bf2"])

    out = pl.pallas_call(
        functools.partial(_fused_cnn_kernel, dims=dims),
        out_shape=jax.ShapeDtypeStruct((n, 1, ncls), jnp.float32),
        grid=(n,),
        in_specs=[pl.BlockSpec((None, H, W * Cin), lambda i: (i, 0, 0))]
                 + [_const_spec(w) for w in weights],
        out_specs=pl.BlockSpec((None, 1, ncls), lambda i: (i, 0, 0)),
        compiler_params=pltpu.CompilerParams(dimension_semantics=("parallel",)),
    )(x2, *weights)
    return out.reshape(n, ncls)


# ----------------------------------------------------------------------------
# pure-numpy reference (for correctness check in __main__)
# ----------------------------------------------------------------------------

def _reference_forward(x, p):
    def conv3x3(x, w, b, pad):
        if pad:
            x = np.pad(x, ((0, 0), (0, 0), (1, 1), (1, 1)))
        n, c, h, ww = x.shape
        co = w.shape[0]
        ho, wo = h - 2, ww - 2
        out = np.zeros((n, co, ho, wo), np.float64)
        for kh in range(3):
            for kw in range(3):
                out += np.einsum('ncij,oc->noij',
                                 x[:, :, kh:kh + ho, kw:kw + wo], w[:, :, kh, kw])
        return out + b[None, :, None, None]

    def pool2x2(x):
        n, c, h, w = x.shape
        hp, wp = h // 2, w // 2
        x = x[:, :, :hp * 2, :wp * 2].reshape(n, c, hp, 2, wp, 2)
        return x.max(axis=(3, 5))

    x = x.astype(np.float64)
    w1, b1 = p["conv1_w"].astype(np.float64), p["conv1_b"].astype(np.float64)
    w2, b2 = p["conv2_w"].astype(np.float64), p["conv2_b"].astype(np.float64)
    h1 = pool2x2(np.maximum(conv3x3(x, w1, b1, 0), 0.0))
    h2 = pool2x2(np.maximum(conv3x3(h1, w2, b2, 1), 0.0))
    feats = h2.reshape(h2.shape[0], -1)
    o = feats @ p["fc1_w"].astype(np.float64).T + p["fc1_b"].astype(np.float64)
    o = o @ p["fc2_w"].astype(np.float64).T + p["fc2_b"].astype(np.float64)
    return o


# ----------------------------------------------------------------------------

if __name__ == "__main__":
    # 16x16 input -> conv(valid) 14x14 -> pool 7x7 -> conv(pad1) 7x7 -> pool 3x3
    # flattened features = channels[-1] * 3 * 3 = 144 = hidden_dims[0]
    N, CIN, H, W = 2, 4, 16, 16
    CHANNELS = [8, 16]
    HIDDEN = [CHANNELS[-1] * 3 * 3, 32]
    NUM_CLASSES = 10

    key = jax.random.PRNGKey(0)
    kx, kp_key = jax.random.split(key)
    x = jax.random.normal(kx, (N, CIN, H, W), jnp.float32)

    raw = init_params(kp_key, CIN, CHANNELS, HIDDEN, NUM_CLASSES)
    kparams, dims = prepare_params(raw, (H, W))        # weight prep hoisted to init

    fwd = jax.jit(functools.partial(cnn_forward, dims=dims))
    out = fwd(x, kparams)
    out = jax.block_until_ready(out)
    assert out.shape == (N, NUM_CLASSES)

    ref = _reference_forward(np.asarray(x), {k: np.asarray(v) for k, v in raw.items()})
    np.testing.assert_allclose(np.asarray(out), ref, rtol=1e-3, atol=2e-4)

    print("KERNEL_OK")
</pallas_src>

<mosaic_0001>
module attributes {stable_mosaic.version = 11 : i64} {
  func.func @_fused_cnn_kernel(%arg0: i32, %arg1: memref<1x16x64xf32, #tpu.memory_space<vmem>>, %arg2: memref<3x64x56xf32, #tpu.memory_space<vmem>>, %arg3: memref<3x64x56xf32, #tpu.memory_space<vmem>>, %arg4: memref<1x56xf32, #tpu.memory_space<vmem>>, %arg5: memref<3x56x48xf32, #tpu.memory_space<vmem>>, %arg6: memref<3x56x48xf32, #tpu.memory_space<vmem>>, %arg7: memref<1x48xf32, #tpu.memory_space<vmem>>, %arg8: memref<144x32xf32, #tpu.memory_space<vmem>>, %arg9: memref<1x32xf32, #tpu.memory_space<vmem>>, %arg10: memref<32x10xf32, #tpu.memory_space<vmem>>, %arg11: memref<1x10xf32, #tpu.memory_space<vmem>>, %arg12: memref<1x1x10xf32, #tpu.memory_space<vmem>>) attributes {dimension_semantics = [#tpu.dimension_semantics<parallel>], iteration_bounds = array<i64: 2>, scalar_prefetch = 0 : i64, scratch_operands = 0 : i64, tpu.core_type = #tpu.core_type<tc>, window_params = [{transform_indices = @transform_0, window_bounds = array<i64: 1, 16, 64>}, {pipeline_mode = #tpu.pipeline_mode<synchronous>, transform_indices = @transform_1, window_bounds = array<i64: 3, 64, 56>}, {pipeline_mode = #tpu.pipeline_mode<synchronous>, transform_indices = @transform_2, window_bounds = array<i64: 3, 64, 56>}, {pipeline_mode = #tpu.pipeline_mode<synchronous>, transform_indices = @transform_3, window_bounds = array<i64: 1, 56>}, {pipeline_mode = #tpu.pipeline_mode<synchronous>, transform_indices = @transform_4, window_bounds = array<i64: 3, 56, 48>}, {pipeline_mode = #tpu.pipeline_mode<synchronous>, transform_indices = @transform_5, window_bounds = array<i64: 3, 56, 48>}, {pipeline_mode = #tpu.pipeline_mode<synchronous>, transform_indices = @transform_6, window_bounds = array<i64: 1, 48>}, {pipeline_mode = #tpu.pipeline_mode<synchronous>, transform_indices = @transform_7, window_bounds = array<i64: 144, 32>}, {pipeline_mode = #tpu.pipeline_mode<synchronous>, transform_indices = @transform_8, window_bounds = array<i64: 1, 32>}, {pipeline_mode = #tpu.pipeline_mode<synchronous>, transform_indices = @transform_9, window_bounds = array<i64: 32, 10>}, {pipeline_mode = #tpu.pipeline_mode<synchronous>, transform_indices = @transform_10, window_bounds = array<i64: 1, 10>}, {transform_indices = @transform_11, window_bounds = array<i64: 1, 1, 10>}]} {
    %c0 = arith.constant 0 : index
    %c0_0 = arith.constant 0 : index
    %c0_1 = arith.constant 0 : index
    %0 = vector.load %arg1[%c0, %c0_0, %c0_1] : memref<1x16x64xf32, #tpu.memory_space<vmem>>, vector<1x16x64xf32>
    %1 = vector.shape_cast %0 : vector<1x16x64xf32> to vector<16x64xf32>
    %c0_2 = arith.constant 0 : index
    %c0_3 = arith.constant 0 : index
    %2 = vector.load %arg4[%c0_2, %c0_3] : memref<1x56xf32, #tpu.memory_space<vmem>>, vector<1x56xf32>
    %c0_4 = arith.constant 0 : index
    %c0_5 = arith.constant 0 : index
    %3 = vector.load %arg4[%c0_4, %c0_5] : memref<1x56xf32, #tpu.memory_space<vmem>>, vector<1x56xf32>
    %4 = vector.extract_strided_slice %1 {offsets = [0, 0], sizes = [14, 64], strides = [1, 1]} : vector<16x64xf32> to vector<14x64xf32>
    %c0_6 = arith.constant 0 : index
    %c0_7 = arith.constant 0 : index
    %c0_8 = arith.constant 0 : index
    %5 = vector.load %arg2[%c0_6, %c0_7, %c0_8] : memref<3x64x56xf32, #tpu.memory_space<vmem>>, vector<1x64x56xf32>
    %6 = vector.shape_cast %5 : vector<1x64x56xf32> to vector<64x56xf32>
    %cst = arith.constant dense<0.000000e+00> : vector<14x56xf32>
    %7 = tpu.matmul %4, %6, %cst {dimension_numbers = #tpu.dot_dimension_numbers<[1], [0], [0], [1], [0, 0, 1, 1], [], []>} : vector<14x64xf32>, vector<64x56xf32>, vector<14x56xf32> -> vector<14x56xf32>
    %8 = vector.broadcast %2 : vector<1x56xf32> to vector<14x56xf32>
    %9 = arith.addf %8, %7 : vector<14x56xf32>
    %c0_9 = arith.constant 0 : index
    %c0_10 = arith.constant 0 : index
    %c0_11 = arith.constant 0 : index
    %10 = vector.load %arg3[%c0_9, %c0_10, %c0_11] : memref<3x64x56xf32, #tpu.memory_space<vmem>>, vector<1x64x56xf32>
    %11 = vector.shape_cast %10 : vector<1x64x56xf32> to vector<64x56xf32>
    %cst_12 = arith.constant dense<0.000000e+00> : vector<14x56xf32>
    %12 = tpu.matmul %4, %11, %cst_12 {dimension_numbers = #tpu.dot_dimension_numbers<[1], [0], [0], [1], [0, 0, 1, 1], [], []>} : vector<14x64xf32>, vector<64x56xf32>, vector<14x56xf32> -> vector<14x56xf32>
    %13 = vector.broadcast %3 : vector<1x56xf32> to vector<14x56xf32>
    %14 = arith.addf %13, %12 : vector<14x56xf32>
    %15 = vector.extract_strided_slice %1 {offsets = [1, 0], sizes = [14, 64], strides = [1, 1]} : vector<16x64xf32> to vector<14x64xf32>
    %c1 = arith.constant 1 : index
    %c0_13 = arith.constant 0 : index
    %c0_14 = arith.constant 0 : index
    %16 = vector.load %arg2[%c1, %c0_13, %c0_14] : memref<3x64x56xf32, #tpu.memory_space<vmem>>, vector<1x64x56xf32>
    %17 = vector.shape_cast %16 : vector<1x64x56xf32> to vector<64x56xf32>
    %cst_15 = arith.constant dense<0.000000e+00> : vector<14x56xf32>
    %18 = tpu.matmul %15, %17, %cst_15 {dimension_numbers = #tpu.dot_dimension_numbers<[1], [0], [0], [1], [0, 0, 1, 1], [], []>} : vector<14x64xf32>, vector<64x56xf32>, vector<14x56xf32> -> vector<14x56xf32>
    %19 = arith.addf %9, %18 : vector<14x56xf32>
    %c1_16 = arith.constant 1 : index
    %c0_17 = arith.constant 0 : index
    %c0_18 = arith.constant 0 : index
    %20 = vector.load %arg3[%c1_16, %c0_17, %c0_18] : memref<3x64x56xf32, #tpu.memory_space<vmem>>, vector<1x64x56xf32>
    %21 = vector.shape_cast %20 : vector<1x64x56xf32> to vector<64x56xf32>
    %cst_19 = arith.constant dense<0.000000e+00> : vector<14x56xf32>
    %22 = tpu.matmul %15, %21, %cst_19 {dimension_numbers = #tpu.dot_dimension_numbers<[1], [0], [0], [1], [0, 0, 1, 1], [], []>} : vector<14x64xf32>, vector<64x56xf32>, vector<14x56xf32> -> vector<14x56xf32>
    %23 = arith.addf %14, %22 : vector<14x56xf32>
    %24 = vector.extract_strided_slice %1 {offsets = [2, 0], sizes = [14, 64], strides = [1, 1]} : vector<16x64xf32> to vector<14x64xf32>
    %c2 = arith.constant 2 : index
    %c0_20 = arith.constant 0 : index
    %c0_21 = arith.constant 0 : index
    %25 = vector.load %arg2[%c2, %c0_20, %c0_21] : memref<3x64x56xf32, #tpu.memory_space<vmem>>, vector<1x64x56xf32>
    %26 = vector.shape_cast %25 : vector<1x64x56xf32> to vector<64x56xf32>
    %cst_22 = arith.constant dense<0.000000e+00> : vector<14x56xf32>
    %27 = tpu.matmul %24, %26, %cst_22 {dimension_numbers = #tpu.dot_dimension_numbers<[1], [0], [0], [1], [0, 0, 1, 1], [], []>} : vector<14x64xf32>, vector<64x56xf32>, vector<14x56xf32> -> vector<14x56xf32>
    %28 = arith.addf %19, %27 : vector<14x56xf32>
    %c2_23 = arith.constant 2 : index
    %c0_24 = arith.constant 0 : index
    %c0_25 = arith.constant 0 : index
    %29 = vector.load %arg3[%c2_23, %c0_24, %c0_25] : memref<3x64x56xf32, #tpu.memory_space<vmem>>, vector<1x64x56xf32>
    %30 = vector.shape_cast %29 : vector<1x64x56xf32> to vector<64x56xf32>
    %cst_26 = arith.constant dense<0.000000e+00> : vector<14x56xf32>
    %31 = tpu.matmul %24, %30, %cst_26 {dimension_numbers = #tpu.dot_dimension_numbers<[1], [0], [0], [1], [0, 0, 1, 1], [], []>} : vector<14x64xf32>, vector<64x56xf32>, vector<14x56xf32> -> vector<14x56xf32>
    %32 = arith.addf %23, %31 : vector<14x56xf32>
    %cst_27 = arith.constant 0.000000e+00 : f32
    %33 = vector.broadcast %cst_27 : f32 to vector<14x56xf32>
    %34 = arith.maximumf %28, %33 : vector<14x56xf32>
    %cst_28 = arith.constant 0.000000e+00 : f32
    %35 = vector.broadcast %cst_28 : f32 to vector<14x56xf32>
    %36 = arith.maximumf %32, %35 : vector<14x56xf32>
    %37 = arith.maximumf %34, %36 : vector<14x56xf32>
    %38 = tpu.iota {dimensions = array<i32: 0>} : vector<7x14xi32>
    %39 = tpu.iota {dimensions = array<i32: 1>} : vector<7x14xi32>
    %c2_i32 = arith.constant 2 : i32
    %40 = vector.broadcast %c2_i32 : i32 to vector<7x14xi32>
    %41 = arith.muli %40, %38 : vector<7x14xi32>
    %c0_i32 = arith.constant 0 : i32
    %42 = vector.broadcast %c0_i32 : i32 to vector<7x14xi32>
    %43 = arith.addi %41, %42 : vector<7x14xi32>
    %44 = arith.cmpi eq, %39, %43 : vector<7x14xi32>
    %cst_29 = arith.constant 1.000000e+00 : f32
    %cst_30 = arith.constant 0.000000e+00 : f32
    %45 = vector.broadcast %cst_29 : f32 to vector<7x14xf32>
    %46 = vector.broadcast %cst_30 : f32 to vector<7x14xf32>
    %47 = arith.select %44, %45, %46 : vector<7x14xi1>, vector<7x14xf32>
    %48 = tpu.iota {dimensions = array<i32: 0>} : vector<7x14xi32>
    %49 = tpu.iota {dimensions = array<i32: 1>} : vector<7x14xi32>
    %c2_i32_31 = arith.constant 2 : i32
    %50 = vector.broadcast %c2_i32_31 : i32 to vector<7x14xi32>
    %51 = arith.muli %50, %48 : vector<7x14xi32>
    %c1_i32 = arith.constant 1 : i32
    %52 = vector.broadcast %c1_i32 : i32 to vector<7x14xi32>
    %53 = arith.addi %51, %52 : vector<7x14xi32>
    %54 = arith.cmpi eq, %49, %53 : vector<7x14xi32>
    %cst_32 = arith.constant 1.000000e+00 : f32
    %cst_33 = arith.constant 0.000000e+00 : f32
    %55 = vector.broadcast %cst_32 : f32 to vector<7x14xf32>
    %56 = vector.broadcast %cst_33 : f32 to vector<7x14xf32>
    %57 = arith.select %54, %55, %56 : vector<7x14xi1>, vector<7x14xf32>
    %cst_34 = arith.constant dense<0.000000e+00> : vector<7x56xf32>
    %58 = tpu.matmul %47, %37, %cst_34 {dimension_numbers = #tpu.dot_dimension_numbers<[1], [0], [0], [1], [0, 0, 1, 1], [], []>} : vector<7x14xf32>, vector<14x56xf32>, vector<7x56xf32> -> vector<7x56xf32>
    %cst_35 = arith.constant dense<0.000000e+00> : vector<7x56xf32>
    %59 = tpu.matmul %57, %37, %cst_35 {dimension_numbers = #tpu.dot_dimension_numbers<[1], [0], [0], [1], [0, 0, 1, 1], [], []>} : vector<7x14xf32>, vector<14x56xf32>, vector<7x56xf32> -> vector<7x56xf32>
    %60 = arith.maximumf %58, %59 : vector<7x56xf32>
    %61 = tpu.iota {dimensions = array<i32: 0>} : vector<7x7xi32>
    %62 = tpu.iota {dimensions = array<i32: 1>} : vector<7x7xi32>
    %c1_i32_36 = arith.constant 1 : i32
    %63 = vector.broadcast %c1_i32_36 : i32 to vector<7x7xi32>
    %64 = arith.muli %63, %61 : vector<7x7xi32>
    %c-1_i32 = arith.constant -1 : i32
    %65 = vector.broadcast %c-1_i32 : i32 to vector<7x7xi32>
    %66 = arith.addi %64, %65 : vector<7x7xi32>
    %67 = arith.cmpi eq, %62, %66 : vector<7x7xi32>
    %cst_37 = arith.constant 1.000000e+00 : f32
    %cst_38 = arith.constant 0.000000e+00 : f32
    %68 = vector.broadcast %cst_37 : f32 to vector<7x7xf32>
    %69 = vector.broadcast %cst_38 : f32 to vector<7x7xf32>
    %70 = arith.select %67, %68, %69 : vector<7x7xi1>, vector<7x7xf32>
    %71 = tpu.iota {dimensions = array<i32: 0>} : vector<7x7xi32>
    %72 = tpu.iota {dimensions = array<i32: 1>} : vector<7x7xi32>
    %c1_i32_39 = arith.constant 1 : i32
    %73 = vector.broadcast %c1_i32_39 : i32 to vector<7x7xi32>
    %74 = arith.muli %73, %71 : vector<7x7xi32>
    %c1_i32_40 = arith.constant 1 : i32
    %75 = vector.broadcast %c1_i32_40 : i32 to vector<7x7xi32>
    %76 = arith.addi %74, %75 : vector<7x7xi32>
    %77 = arith.cmpi eq, %72, %76 : vector<7x7xi32>
    %cst_41 = arith.constant 1.000000e+00 : f32
    %cst_42 = arith.constant 0.000000e+00 : f32
    %78 = vector.broadcast %cst_41 : f32 to vector<7x7xf32>
    %79 = vector.broadcast %cst_42 : f32 to vector<7x7xf32>
    %80 = arith.select %77, %78, %79 : vector<7x7xi1>, vector<7x7xf32>
    %cst_43 = arith.constant dense<0.000000e+00> : vector<7x56xf32>
    %81 = tpu.matmul %70, %60, %cst_43 {dimension_numbers = #tpu.dot_dimension_numbers<[1], [0], [0], [1], [0, 0, 1, 1], [], []>} : vector<7x7xf32>, vector<7x56xf32>, vector<7x56xf32> -> vector<7x56xf32>
    %cst_44 = arith.constant dense<0.000000e+00> : vector<7x56xf32>
    %82 = tpu.matmul %80, %60, %cst_44 {dimension_numbers = #tpu.dot_dimension_numbers<[1], [0], [0], [1], [0, 0, 1, 1], [], []>} : vector<7x7xf32>, vector<7x56xf32>, vector<7x56xf32> -> vector<7x56xf32>
    %c0_45 = arith.constant 0 : index
    %c0_46 = arith.constant 0 : index
    %83 = vector.load %arg7[%c0_45, %c0_46] : memref<1x48xf32, #tpu.memory_space<vmem>>, vector<1x48xf32>
    %c0_47 = arith.constant 0 : index
    %c0_48 = arith.constant 0 : index
    %84 = vector.load %arg7[%c0_47, %c0_48] : memref<1x48xf32, #tpu.memory_space<vmem>>, vector<1x48xf32>
    %c0_49 = arith.constant 0 : index
    %c0_50 = arith.constant 0 : index
    %c0_51 = arith.constant 0 : index
    %85 = vector.load %arg5[%c0_49, %c0_50, %c0_51] : memref<3x56x48xf32, #tpu.memory_space<vmem>>, vector<1x56x48xf32>
    %86 = vector.shape_cast %85 : vector<1x56x48xf32> to vector<56x48xf32>
    %cst_52 = arith.constant dense<0.000000e+00> : vector<7x48xf32>
    %87 = tpu.matmul %81, %86, %cst_52 {dimension_numbers = #tpu.dot_dimension_numbers<[1], [0], [0], [1], [0, 0, 1, 1], [], []>} : vector<7x56xf32>, vector<56x48xf32>, vector<7x48xf32> -> vector<7x48xf32>
    %88 = vector.broadcast %83 : vector<1x48xf32> to vector<7x48xf32>
    %89 = arith.addf %88, %87 : vector<7x48xf32>
    %c0_53 = arith.constant 0 : index
    %c0_54 = arith.constant 0 : index
    %c0_55 = arith.constant 0 : index
    %90 = vector.load %arg6[%c0_53, %c0_54, %c0_55] : memref<3x56x48xf32, #tpu.memory_space<vmem>>, vector<1x56x48xf32>
    %91 = vector.shape_cast %90 : vector<1x56x48xf32> to vector<56x48xf32>
    %cst_56 = arith.constant dense<0.000000e+00> : vector<7x48xf32>
    %92 = tpu.matmul %81, %91, %cst_56 {dimension_numbers = #tpu.dot_dimension_numbers<[1], [0], [0], [1], [0, 0, 1, 1], [], []>} : vector<7x56xf32>, vector<56x48xf32>, vector<7x48xf32> -> vector<7x48xf32>
    %93 = vector.broadcast %84 : vector<1x48xf32> to vector<7x48xf32>
    %94 = arith.addf %93, %92 : vector<7x48xf32>
    %c1_57 = arith.constant 1 : index
    %c0_58 = arith.constant 0 : index
    %c0_59 = arith.constant 0 : index
    %95 = vector.load %arg5[%c1_57, %c0_58, %c0_59] : memref<3x56x48xf32, #tpu.memory_space<vmem>>, vector<1x56x48xf32>
    %96 = vector.shape_cast %95 : vector<1x56x48xf32> to vector<56x48xf32>
    %cst_60 = arith.constant dense<0.000000e+00> : vector<7x48xf32>
    %97 = tpu.matmul %60, %96, %cst_60 {dimension_numbers = #tpu.dot_dimension_numbers<[1], [0], [0], [1], [0, 0, 1, 1], [], []>} : vector<7x56xf32>, vector<56x48xf32>, vector<7x48xf32> -> vector<7x48xf32>
    %98 = arith.addf %89, %97 : vector<7x48xf32>
    %c1_61 = arith.constant 1 : index
    %c0_62 = arith.constant 0 : index
    %c0_63 = arith.constant 0 : index
    %99 = vector.load %arg6[%c1_61, %c0_62, %c0_63] : memref<3x56x48xf32, #tpu.memory_space<vmem>>, vector<1x56x48xf32>
    %100 = vector.shape_cast %99 : vector<1x56x48xf32> to vector<56x48xf32>
    %cst_64 = arith.constant dense<0.000000e+00> : vector<7x48xf32>
    %101 = tpu.matmul %60, %100, %cst_64 {dimension_numbers = #tpu.dot_dimension_numbers<[1], [0], [0], [1], [0, 0, 1, 1], [], []>} : vector<7x56xf32>, vector<56x48xf32>, vector<7x48xf32> -> vector<7x48xf32>
    %102 = arith.addf %94, %101 : vector<7x48xf32>
    %c2_65 = arith.constant 2 : index
    %c0_66 = arith.constant 0 : index
    %c0_67 = arith.constant 0 : index
    %103 = vector.load %arg5[%c2_65, %c0_66, %c0_67] : memref<3x56x48xf32, #tpu.memory_space<vmem>>, vector<1x56x48xf32>
    %104 = vector.shape_cast %103 : vector<1x56x48xf32> to vector<56x48xf32>
    %cst_68 = arith.constant dense<0.000000e+00> : vector<7x48xf32>
    %105 = tpu.matmul %82, %104, %cst_68 {dimension_numbers = #tpu.dot_dimension_numbers<[1], [0], [0], [1], [0, 0, 1, 1], [], []>} : vector<7x56xf32>, vector<56x48xf32>, vector<7x48xf32> -> vector<7x48xf32>
    %106 = arith.addf %98, %105 : vector<7x48xf32>
    %c2_69 = arith.constant 2 : index
    %c0_70 = arith.constant 0 : index
    %c0_71 = arith.constant 0 : index
    %107 = vector.load %arg6[%c2_69, %c0_70, %c0_71] : memref<3x56x48xf32, #tpu.memory_space<vmem>>, vector<1x56x48xf32>
    %108 = vector.shape_cast %107 : vector<1x56x48xf32> to vector<56x48xf32>
    %cst_72 = arith.constant dense<0.000000e+00> : vector<7x48xf32>
    %109 = tpu.matmul %82, %108, %cst_72 {dimension_numbers = #tpu.dot_dimension_numbers<[1], [0], [0], [1], [0, 0, 1, 1], [], []>} : vector<7x56xf32>, vector<56x48xf32>, vector<7x48xf32> -> vector<7x48xf32>
    %110 = arith.addf %102, %109 : vector<7x48xf32>
    %cst_73 = arith.constant 0.000000e+00 : f32
    %111 = vector.broadcast %cst_73 : f32 to vector<7x48xf32>
    %112 = arith.maximumf %106, %111 : vector<7x48xf32>
    %cst_74 = arith.constant 0.000000e+00 : f32
    %113 = vector.broadcast %cst_74 : f32 to vector<7x48xf32>
    %114 = arith.maximumf %110, %113 : vector<7x48xf32>
    %115 = arith.maximumf %112, %114 : vector<7x48xf32>
    %116 = tpu.iota {dimensions = array<i32: 0>} : vector<3x7xi32>
    %117 = tpu.iota {dimensions = array<i32: 1>} : vector<3x7xi32>
    %c2_i32_75 = arith.constant 2 : i32
    %118 = vector.broadcast %c2_i32_75 : i32 to vector<3x7xi32>
    %119 = arith.muli %118, %116 : vector<3x7xi32>
    %c0_i32_76 = arith.constant 0 : i32
    %120 = vector.broadcast %c0_i32_76 : i32 to vector<3x7xi32>
    %121 = arith.addi %119, %120 : vector<3x7xi32>
    %122 = arith.cmpi eq, %117, %121 : vector<3x7xi32>
    %cst_77 = arith.constant 1.000000e+00 : f32
    %cst_78 = arith.constant 0.000000e+00 : f32
    %123 = vector.broadcast %cst_77 : f32 to vector<3x7xf32>
    %124 = vector.broadcast %cst_78 : f32 to vector<3x7xf32>
    %125 = arith.select %122, %123, %124 : vector<3x7xi1>, vector<3x7xf32>
    %126 = tpu.iota {dimensions = array<i32: 0>} : vector<3x7xi32>
    %127 = tpu.iota {dimensions = array<i32: 1>} : vector<3x7xi32>
    %c2_i32_79 = arith.constant 2 : i32
    %128 = vector.broadcast %c2_i32_79 : i32 to vector<3x7xi32>
    %129 = arith.muli %128, %126 : vector<3x7xi32>
    %c1_i32_80 = arith.constant 1 : i32
    %130 = vector.broadcast %c1_i32_80 : i32 to vector<3x7xi32>
    %131 = arith.addi %129, %130 : vector<3x7xi32>
    %132 = arith.cmpi eq, %127, %131 : vector<3x7xi32>
    %cst_81 = arith.constant 1.000000e+00 : f32
    %cst_82 = arith.constant 0.000000e+00 : f32
    %133 = vector.broadcast %cst_81 : f32 to vector<3x7xf32>
    %134 = vector.broadcast %cst_82 : f32 to vector<3x7xf32>
    %135 = arith.select %132, %133, %134 : vector<3x7xi1>, vector<3x7xf32>
    %cst_83 = arith.constant dense<0.000000e+00> : vector<3x48xf32>
    %136 = tpu.matmul %125, %115, %cst_83 {dimension_numbers = #tpu.dot_dimension_numbers<[1], [0], [0], [1], [0, 0, 1, 1], [], []>} : vector<3x7xf32>, vector<7x48xf32>, vector<3x48xf32> -> vector<3x48xf32>
    %cst_84 = arith.constant dense<0.000000e+00> : vector<3x48xf32>
    %137 = tpu.matmul %135, %115, %cst_84 {dimension_numbers = #tpu.dot_dimension_numbers<[1], [0], [0], [1], [0, 0, 1, 1], [], []>} : vector<3x7xf32>, vector<7x48xf32>, vector<3x48xf32> -> vector<3x48xf32>
    %138 = arith.maximumf %136, %137 : vector<3x48xf32>
    %c0_85 = arith.constant 0 : index
    %c0_86 = arith.constant 0 : index
    %139 = vector.load %arg9[%c0_85, %c0_86] : memref<1x32xf32, #tpu.memory_space<vmem>>, vector<1x32xf32>
    %140 = vector.extract_strided_slice %138 {offsets = [0, 0], sizes = [1, 48], strides = [1, 1]} : vector<3x48xf32> to vector<1x48xf32>
    %c0_87 = arith.constant 0 : index
    %c0_88 = arith.constant 0 : index
    %141 = vector.load %arg8[%c0_87, %c0_88] : memref<144x32xf32, #tpu.memory_space<vmem>>, vector<48x32xf32>
    %cst_89 = arith.constant dense<0.000000e+00> : vector<1x32xf32>
    %142 = tpu.matmul %140, %141, %cst_89 {dimension_numbers = #tpu.dot_dimension_numbers<[1], [0], [0], [1], [0, 0, 1, 1], [], []>} : vector<1x48xf32>, vector<48x32xf32>, vector<1x32xf32> -> vector<1x32xf32>
    %143 = arith.addf %139, %142 : vector<1x32xf32>
    %144 = vector.extract_strided_slice %138 {offsets = [1, 0], sizes = [1, 48], strides = [1, 1]} : vector<3x48xf32> to vector<1x48xf32>
    %c48 = arith.constant 48 : index
    %c0_90 = arith.constant 0 : index
    %145 = vector.load %arg8[%c48, %c0_90] : memref<144x32xf32, #tpu.memory_space<vmem>>, vector<48x32xf32>
    %cst_91 = arith.constant dense<0.000000e+00> : vector<1x32xf32>
    %146 = tpu.matmul %144, %145, %cst_91 {dimension_numbers = #tpu.dot_dimension_numbers<[1], [0], [0], [1], [0, 0, 1, 1], [], []>} : vector<1x48xf32>, vector<48x32xf32>, vector<1x32xf32> -> vector<1x32xf32>
    %147 = arith.addf %143, %146 : vector<1x32xf32>
    %148 = vector.extract_strided_slice %138 {offsets = [2, 0], sizes = [1, 48], strides = [1, 1]} : vector<3x48xf32> to vector<1x48xf32>
    %c96 = arith.constant 96 : index
    %c0_92 = arith.constant 0 : index
    %149 = vector.load %arg8[%c96, %c0_92] : memref<144x32xf32, #tpu.memory_space<vmem>>, vector<48x32xf32>
    %cst_93 = arith.constant dense<0.000000e+00> : vector<1x32xf32>
    %150 = tpu.matmul %148, %149, %cst_93 {dimension_numbers = #tpu.dot_dimension_numbers<[1], [0], [0], [1], [0, 0, 1, 1], [], []>} : vector<1x48xf32>, vector<48x32xf32>, vector<1x32xf32> -> vector<1x32xf32>
    %151 = arith.addf %147, %150 : vector<1x32xf32>
    %c0_94 = arith.constant 0 : index
    %c0_95 = arith.constant 0 : index
    %152 = vector.load %arg10[%c0_94, %c0_95] : memref<32x10xf32, #tpu.memory_space<vmem>>, vector<32x10xf32>
    %cst_96 = arith.constant dense<0.000000e+00> : vector<1x10xf32>
    %153 = tpu.matmul %151, %152, %cst_96 {dimension_numbers = #tpu.dot_dimension_numbers<[1], [0], [0], [1], [0, 0, 1, 1], [], []>} : vector<1x32xf32>, vector<32x10xf32>, vector<1x10xf32> -> vector<1x10xf32>
    %c0_97 = arith.constant 0 : index
    %c0_98 = arith.constant 0 : index
    %154 = vector.load %arg11[%c0_97, %c0_98] : memref<1x10xf32, #tpu.memory_space<vmem>>, vector<1x10xf32>
    %155 = arith.addf %153, %154 : vector<1x10xf32>
    %c0_99 = arith.constant 0 : index
    %c0_100 = arith.constant 0 : index
    %c0_101 = arith.constant 0 : index
    %156 = vector.load %arg12[%c0_99, %c0_100, %c0_101] : memref<1x1x10xf32, #tpu.memory_space<vmem>>, vector<1x1x10xf32>
    %157 = vector.shape_cast %156 : vector<1x1x10xf32> to vector<1x10xf32>
    %158 = vector.shape_cast %155 : vector<1x10xf32> to vector<1x1x10xf32>
    tpu.vector_store %arg12[%c0_99, %c0_100, %c0_101], %158 {strides = array<i32>} : memref<1x1x10xf32, #tpu.memory_space<vmem>>, vector<1x1x10xf32>,
    return
  }
  func.func @transform_0(%arg0: i32) -> (i32, i32, i32) {
    %c0_i32 = arith.constant 0 : i32
    %c0_i32_0 = arith.constant 0 : i32
    %c0_i32_1 = arith.constant 0 : i32
    return %arg0, %c0_i32, %c0_i32_0 : i32, i32, i32
  }
  func.func @transform_1(%arg0: i32) -> (i32, i32, i32) {
    %c0_i32 = arith.constant 0 : i32
    %c0_i32_0 = arith.constant 0 : i32
    %c0_i32_1 = arith.constant 0 : i32
    %c0_i32_2 = arith.constant 0 : i32
    return %c0_i32, %c0_i32_0, %c0_i32_1 : i32, i32, i32
  }
  func.func @transform_2(%arg0: i32) -> (i32, i32, i32) {
    %c0_i32 = arith.constant 0 : i32
    %c0_i32_0 = arith.constant 0 : i32
    %c0_i32_1 = arith.constant 0 : i32
    %c0_i32_2 = arith.constant 0 : i32
    return %c0_i32, %c0_i32_0, %c0_i32_1 : i32, i32, i32
  }
  func.func @transform_3(%arg0: i32) -> (i32, i32) {
    %c0_i32 = arith.constant 0 : i32
    %c0_i32_0 = arith.constant 0 : i32
    %c0_i32_1 = arith.constant 0 : i32
    return %c0_i32, %c0_i32_0 : i32, i32
  }
  func.func @transform_4(%arg0: i32) -> (i32, i32, i32) {
    %c0_i32 = arith.constant 0 : i32
    %c0_i32_0 = arith.constant 0 : i32
    %c0_i32_1 = arith.constant 0 : i32
    %c0_i32_2 = arith.constant 0 : i32
    return %c0_i32, %c0_i32_0, %c0_i32_1 : i32, i32, i32
  }
  func.func @transform_5(%arg0: i32) -> (i32, i32, i32) {
    %c0_i32 = arith.constant 0 : i32
    %c0_i32_0 = arith.constant 0 : i32
    %c0_i32_1 = arith.constant 0 : i32
    %c0_i32_2 = arith.constant 0 : i32
    return %c0_i32, %c0_i32_0, %c0_i32_1 : i32, i32, i32
  }
  func.func @transform_6(%arg0: i32) -> (i32, i32) {
    %c0_i32 = arith.constant 0 : i32
    %c0_i32_0 = arith.constant 0 : i32
    %c0_i32_1 = arith.constant 0 : i32
    return %c0_i32, %c0_i32_0 : i32, i32
  }
  func.func @transform_7(%arg0: i32) -> (i32, i32) {
    %c0_i32 = arith.constant 0 : i32
    %c0_i32_0 = arith.constant 0 : i32
    %c0_i32_1 = arith.constant 0 : i32
    return %c0_i32, %c0_i32_0 : i32, i32
  }
  func.func @transform_8(%arg0: i32) -> (i32, i32) {
    %c0_i32 = arith.constant 0 : i32
    %c0_i32_0 = arith.constant 0 : i32
    %c0_i32_1 = arith.constant 0 : i32
    return %c0_i32, %c0_i32_0 : i32, i32
  }
  func.func @transform_9(%arg0: i32) -> (i32, i32) {
    %c0_i32 = arith.constant 0 : i32
    %c0_i32_0 = arith.constant 0 : i32
    %c0_i32_1 = arith.constant 0 : i32
    return %c0_i32, %c0_i32_0 : i32, i32
  }
  func.func @transform_10(%arg0: i32) -> (i32, i32) {
    %c0_i32 = arith.constant 0 : i32
    %c0_i32_0 = arith.constant 0 : i32
    %c0_i32_1 = arith.constant 0 : i32
    return %c0_i32, %c0_i32_0 : i32, i32
  }
  func.func @transform_11(%arg0: i32) -> (i32, i32, i32) {
    %c0_i32 = arith.constant 0 : i32
    %c0_i32_0 = arith.constant 0 : i32
    %c0_i32_1 = arith.constant 0 : i32
    return %arg0, %c0_i32, %c0_i32_0 : i32, i32, i32
  }
}

</mosaic_0001>

<bundles_post_ra>
// kernel: cnn_forward.1
= control target key start
LH: loop header
LB: loop body
LE: loop exit
PB: predicated region body
PF: predicated region fallthrough
CT: control target
= control target key end

     0   :  { %16 = vsyncpa [#allocation3], 0  ;;  %s1918_s0 = inlined_call_operand.vmem [shape: f32[2,16,64], index: 0, kind: input, shape index: {}]   ;;  %s1919_s1 = inlined_call_operand.vmem [shape: f32[3,64,56], index: 1, kind: input, shape index: {}]   ;;  %s1920_s2 = inlined_call_operand.vmem [shape: f32[3,64,56], index: 2, kind: input, shape index: {}]   ;;  %s1921_s3 = inlined_call_operand.vmem [shape: f32[1,56], index: 3, kind: input, shape index: {}]   ;;  %s1922_s4 = inlined_call_operand.vmem [shape: f32[3,56,48], index: 4, kind: input, shape index: {}]   ;;  %s1923_s5 = inlined_call_operand.vmem [shape: f32[3,56,48], index: 5, kind: input, shape index: {}]   ;;  %s1924_s6 = inlined_call_operand.vmem [shape: f32[1,48], index: 6, kind: input, shape index: {}]   ;;  %s1925_s7 = inlined_call_operand.vmem [shape: f32[144,32], index: 7, kind: input, shape index: {}]   ;;  %s1926_s8 = inlined_call_operand.vmem [shape: f32[1,32], index: 8, kind: input, shape index: {}]   ;;  %s1927_s9 = inlined_call_operand.vmem [shape: f32[32,10], index: 9, kind: input, shape index: {}]   ;;  %s1928_s10 = inlined_call_operand.vmem [shape: f32[1,10], index: 10, kind: input, shape index: {}]   ;;  %s1929_s11 = inlined_call_operand.hbm [shape: f32[2,1,10], index: 11, kind: output, shape index: {}]  }
   0x1   :  { %18 = vsyncpa [#allocation3 + $0x1], 0  ;;  %s1435_s17 = smov 0   ;;  %s1437_s18 = smov 0  }
   0x2   :  { %s1439_s19 = smov 0   ;;  %s1441_s20 = smov 0  }
   0x3 LB: > { %1931 = sst [smem:[#allocation5_spill]] %s1368_s19  ;;  %s1456_s21 = sadd.s32 4294967295, %s1372_s20   ;;  %s1372_s20 = sphi %s1441_s20, %s1939_s20   ;;  %s1368_s19 = sphi %s1439_s19, %s1936_s19   ;;  %s1364_s18 = sphi %s1437_s18, %s1938_s18   ;;  %s1360_s17 = sphi %s1435_s17, %s1937_s17  }
   0x4   : > { %s1165_s22 = sadd.s32 4294967294, %s1372_s20   ;;  %s1460_s23 = sadd.s32 1, %s1372_s20  }
   0x5   : > { %s267_s24 = sadd.s32 1, %s1368_s19  ;;  %s264_s25 = ssub.s32 %s1372_s20, %s1460_s23 }
   0x6   : > { %p277_p0 = scmp.ne.s32.totalorder %s1368_s19, %s1364_s18  ;;  %p265_p1 = scmp.eq.s32.totalorder %s264_s25, 0 }
   0x7   : > { %p278_p2 = scmp.eq.s32.totalorder %s1456_s21, 1  ;;  %p283_p3 = scmp.ne.s32.totalorder %s1364_s18, %s1360_s17 }
   0x8   : > { %p284_p4 = scmp.eq.s32.totalorder %s1165_s22, 1  ;;  %p1168_p7 = scmp.ge.s32.totalorder %s1372_s20, 1 }
   0x9   : > { %s1471_s26 = scalar_select %p265_p1, %s1368_s19, %s267_s24  }
   0xa   : > { %p1473_p5 = por %p278_p2, %p277_p0  ;;  %p1477_p6 = por %p284_p4, %p283_p3 }
   0xb   : > { %1932 = sst [smem:[#allocation6_spill]] %s1471_s26  ;;  %p340_p8 = scmp.lt.s32.totalorder %s1372_s20, 3 }
   0xd   : > { %p341_p9 = pnand %p1168_p7, %p340_p8 }
   0xe   : > { %p379_p10 = scmp.lt.s32.totalorder (!%p341_p9), %s1456_s21, 1  ;;  %s1106_s15 = scalar_lea.hbm (!%p341_p9), %s1929_s11, %s1456_s21 }
   0xf   : > { %344 = sbr.rel (%p341_p9) target bundleno = 1014 (0x3f6), region = 64  ;;  %s1110_s26 = sshll.u32 (!%p341_p9), %s1106_s15, 4  ;;  %s1111_s26 = int_to_ptr.hbm [resolvable:$true] %s1110_s26 }
  0x10   : > { %s1324_s30 = sshra.s32 (!%p341_p9), %s1111_s26, 4  ;;  %s1330_s14 = scalar_lea.hbm (!%p341_p9), %s1929_s11, 2  ;;  %s1325_s30 = int_to_ptr.hbm [resolvable:$true] %s1324_s30 }
  0x11   : > { %s1326_s12 = scalar_lea.hbm (!%p341_p9), %s1325_s30, 1  ;;  %p1331_p0 = scmp.lt.s32.totalorder (!%p341_p9), %s1325_s30, %s1929_s11 }
  0x12   : > { %p1327_p11 = scmp.ne.s32.totalorder (!%p341_p9), %s1325_s30, %s1326_s12  ;;  %p1332_p1 = scmp.lt.s32.totalorder (!%p341_p9), %s1330_s14, %s1326_s12 }
  0x14   : > { %v394_v0 = vld [vmem:[%s1919_s1 + $0x38] sm:$0xff]  ;;  %v393_v4 = vld [vmem:[%s1919_s1 + $0x30] sm:$0xff]  ;;  %v392_v8 = vld [vmem:[%s1919_s1 + $0x28] sm:$0xff]  ;;  %s380_s24 = scalar_select %p379_p10, %s1456_s21, 1  ;;  %vm472_vm0 = vcmask 1046528   ;;  %vm395_vm1 = vcmask 523264   ;;  %v621_v62 = vlaneseq }
  0x15   : > { %v437_v1 = vld [vmem:[%s1920_s2 + $0x38] sm:$0xff]  ;;  %410 = vmatpush.msra.mxu0 %v394_v0  ;;  %v436_v5 = vld [vmem:[%s1920_s2 + $0x30] sm:$0xff]  ;;  %v435_v9 = vld [vmem:[%s1920_s2 + $0x28] sm:$0xff]  ;;  %vm548_vm2 = vcmask 1045504   ;;  %vm631_vm5 = vcmask 113664   ;;  %vm688_vm8 = vcmask 56320   ;;  %p1328_p12 = pnand %p1327_p11, %p1473_p5  ;;  %p1333_p2 = por %p1332_p1, %p1331_p0 }
  0x16   : > { %v1182_v2 = vld [vmem:[%s1919_s1 + $0x78] sm:$0xff]  ;;  %446 = vmatpush.msra.mxu1 %v437_v1  ;;  %v1181_v6 = vld [vmem:[%s1919_s1 + $0x70] sm:$0xff]  ;;  %v1180_v10 = vld [vmem:[%s1919_s1 + $0x68] sm:$0xff]  ;;  %s1267_s25 = sshll.u32 %s380_s24, 4  ;;  %vm746_vm9 = vcmask 457728   ;;  %vm981_vm10 = vcmask 392192  }
  0x17   : > { %v1192_v3 = vld [vmem:[%s1920_s2 + $0x78] sm:$0xff]  ;;  %488 = vmatpush.msra.mxu2 %v1182_v2  ;;  %v1191_v7 = vld [vmem:[%s1920_s2 + $0x70] sm:$0xff]  ;;  %411 = vmatpush.msra.mxu0 %v393_v4  ;;  %v1190_v11 = vld [vmem:[%s1920_s2 + $0x68] sm:$0xff]  ;;  %s383_s19 = scalar_lea.vmem %s1918_s0, %s1267_s25  ;;  %v622_v2 = vshrl.u32 %v621_v62, 7  ;;  %vm1071_vm11 = vcmask 261120   ;;  %vm1095_vm12 = vcmask 73728   ;;  %p1329_p13 = pneg %p1328_p12 }
  0x18   : > { %522 = vmatpush.msra.mxu3 %v1192_v3  ;;  %447 = vmatpush.msra.mxu1 %v436_v5  ;;  %v391_v12 = vld [vmem:[%s1919_s1 + $0x20] sm:$0xff]  ;;  %v390_v16 = vld [vmem:[%s1919_s1 + $0x18] sm:$0xff]  ;;  %v389_v20 = vld [vmem:[%s1919_s1 + $0x10] sm:$0xff] }
  0x19   : > { %489 = vmatpush.msra.mxu2 %v1181_v6  ;;  %v434_v13 = vld [vmem:[%s1920_s2 + $0x20] sm:$0xff]  ;;  %412 = vmatpush.msra.mxu0 %v392_v8  ;;  %v433_v17 = vld [vmem:[%s1920_s2 + $0x18] sm:$0xff]  ;;  %v432_v21 = vld [vmem:[%s1920_s2 + $0x10] sm:$0xff]  ;;  %p1334_p3 = pnand %p1333_p2, %p1329_p13 }
  0x1a   : > { %523 = vmatpush.msra.mxu3 %v1191_v7  ;;  %448 = vmatpush.msra.mxu1 %v435_v9  ;;  %v1179_v14 = vld [vmem:[%s1919_s1 + $0x60] sm:$0xff]  ;;  %v1178_v18 = vld [vmem:[%s1919_s1 + $0x58] sm:$0xff]  ;;  %v1177_v22 = vld [vmem:[%s1919_s1 + $0x50] sm:$0xff]  ;;  %v625_v7 = vmul.u32 2, %v622_v2 }
  0x1b   : > { %v1189_v15 = vld [vmem:[%s1920_s2 + $0x60] sm:$0xff]  ;;  %490 = vmatpush.msra.mxu2 %v1180_v10  ;;  %413 = vmatpush.msra.mxu0 %v391_v12  ;;  %v1188_v19 = vld [vmem:[%s1920_s2 + $0x58] sm:$0xff]  ;;  %v1187_v23 = vld [vmem:[%s1920_s2 + $0x50] sm:$0xff] }
  0x1c   : > { %524 = vmatpush.msra.mxu3 %v1190_v11  ;;  %449 = vmatpush.msra.mxu1 %v434_v13  ;;  %v388_v24 = vld [vmem:[%s1919_s1 + $0x8] sm:$0xff]  ;;  %v1566_v26 = vld [vmem:[%s383_s19] sm:$0xff]  ;;  %v1202_v37 = vld [vmem:[%s1919_s1 + $0xb8] sm:$0xff] }
  0x1d   : > { %491 = vmatpush.msra.mxu2 %v1179_v14  ;;  %414 = vmatpush.msra.mxu0 %v390_v16  ;;  %v431_v25 = vld [vmem:[%s1920_s2 + $0x8] sm:$0xff]  ;;  %v473_v30 = vrot.slane %v1566_v26, 1  ;;  %v387_v31 = vld [vmem:[%s1919_s1] sm:$0xff]  ;;  %v1212_v38 = vld [vmem:[%s1920_s2 + $0xb8] sm:$0xff]  ;;  %v549_v49 = vrot.slane %v1566_v26, 2 }
  0x1e   : > { %525 = vmatpush.msra.mxu3 %v1189_v15  ;;  %450 = vmatpush.msra.mxu1 %v433_v17  ;;  %v1176_v27 = vld [vmem:[%s1919_s1 + $0x48] sm:$0xff]  ;;  %v430_v32 = vld [vmem:[%s1920_s2] sm:$0xff]  ;;  %v1201_v39 = vld [vmem:[%s1919_s1 + $0xb0] sm:$0xff] }
  0x1f   : > { %492 = vmatpush.msra.mxu2 %v1178_v18  ;;  %415 = vmatpush.msra.mxu0 %v389_v20  ;;  %v1186_v28 = vld [vmem:[%s1920_s2 + $0x48] sm:$0xff]  ;;  %v1175_v34 = vld [vmem:[%s1919_s1 + $0x40] sm:$0xff]  ;;  %v1211_v40 = vld [vmem:[%s1920_s2 + $0xb0] sm:$0xff]  ;;  %v1655_v18 = vand.u32 127, %v621_v62 }
  0x20   : > { %526 = vmatpush.msra.mxu3 %v1188_v19  ;;  %451 = vmatpush.msra.mxu1 %v432_v21  ;;  %v385_v29 = vld [vmem:[%s383_s19 + $0x8] sm:$0xff]  ;;  %v1185_v35 = vld [vmem:[%s1920_s2 + $0x40] sm:$0xff]  ;;  %v1198_v45 = vld [vmem:[%s1919_s1 + $0x98] sm:$0xff]  ;;  %v628_v19 = vadd.s32 1, %v625_v7  ;;  %s377_s19 = sand.u32 1, %s1364_s18  }
  0x21   : > { %493 = vmatpush.msra.mxu2 %v1177_v22  ;;  %v474_v33 = vrot.slane %v385_v29, 1  ;;  %416 = vmatpush.msra.mxu0 %v388_v24  ;;  %v1200_v41 = vld [vmem:[%s1919_s1 + $0xa8] sm:$0xff]  ;;  %v1199_v43 = vld [vmem:[%s1919_s1 + $0xa0] sm:$0xff]  ;;  %v1208_v46 = vld [vmem:[%s1920_s2 + $0x98] sm:$0xff]  ;;  %v550_v50 = vrot.slane %v385_v29, 2  ;;  %vm626_vm3 = vcmp.eq.s32.totalorder %v1655_v18, %v625_v7  ;;  %s378_s22 = scalar_lea.vmem [#allocation2], %s377_s19 }
  0x22   : > { %527 = vmatpush.msra.mxu3 %v1187_v23  ;;  %452 = vmatpush.msra.mxu1 %v431_v25  ;;  %v1210_v42 = vld [vmem:[%s1920_s2 + $0xa8] sm:$0xff]  ;;  %v1209_v44 = vld [vmem:[%s1920_s2 + $0xa0] sm:$0xff]  ;;  %v1197_v47 = vld [vmem:[%s1919_s1 + $0x90] sm:$0xff]  ;;  %vm629_vm4 = vcmp.eq.s32.totalorder %v1655_v18, %v628_v19  ;;  %s1108_s29 = sshll.u32 %s378_s22, 4  ;;  %s1098_s25 = scalar_lea.sflag [#allocation3], %s377_s19  ;;  %s1109_s29 = int_to_ptr.vmem [resolvable:$true] %s1108_s29 }
  0x23   : > { %494 = vmatpush.msra.mxu2 %v1176_v27  ;;  %417 = vmatpush.msra.mxu0 %v387_v31  ;;  %v475_v36 = vsel %vm472_vm0, %v473_v30, %v474_v33  ;;  %v1207_v48 = vld [vmem:[%s1920_s2 + $0x90] sm:$0xff]  ;;  %v1196_v51 = vld [vmem:[%s1919_s1 + $0x88] sm:$0xff]  ;;  %v1195_v53 = vld [vmem:[%s1919_s1 + $0x80] sm:$0xff]  ;;  %v551_v55 = vsel %vm548_vm2, %v549_v49, %v550_v50 }
  0x24   : > { %528 = vmatpush.msra.mxu3 %v1186_v28  ;;  %453 = vmatpush.msra.mxu1 %v430_v32  ;;  %v1206_v52 = vld [vmem:[%s1920_s2 + $0x88] sm:$0xff]  ;;  %v1205_v54 = vld [vmem:[%s1920_s2 + $0x80] sm:$0xff]  ;;  %v1374_v28 = vmov 0.0   ;;  %v745_v31 = vld [vmem:[%s1922_s4 + $0x30] sm:$0xff] }
  0x25   : > { %495 = vmatpush.msra.mxu2 %v1175_v34  ;;  %1171 = vmatmul.msk.f32.vlgmr.msra.gmra.mxu0 %vm395_vm1, %v1566_v26  ;;  %v1308_v63 = vld [vmem:[%s1921_s3] ss:$0 sm:$0xff]  ;;  %v1663_v30 = vsel %vm629_vm4, 1.0, %v1374_v28  ;;  %v780_v32 = vld [vmem:[%s1923_s5 + $0x30] sm:$0xff]  ;;  %v779_v34 = vld [vmem:[%s1923_s5 + $0x28] sm:$0xff] }
  0x26   : > { %529 = vmatpush.msra.mxu3 %v1185_v35  ;;  %1173 = vmatmul.msk.f32.vlgmr.msra.gmra.mxu1 %vm395_vm1, %v1566_v26  ;;  %v743_v35 = vld [vmem:[%s1922_s4 + $0x20] sm:$0xff]  ;;  %v1246_v49 = vld [vmem:[%s1922_s4 + $0x98] sm:$0xff]  ;;  %v1236_v62 = vld [vmem:[%s1923_s5 + $0x50] sm:$0xff] }
  0x27   : > { %1183 = vmatmul.msk.f32.vlgmr.msra.gmra.mxu2 %vm395_vm1, %v475_v36  ;;  %1193 = vmatmul.msk.f32.vlgmr.msra.gmra.mxu3 %vm395_vm1, %v475_v36  ;;  %v778_v36 = vld [vmem:[%s1923_s5 + $0x20] sm:$0xff]  ;;  %v1253_v7 = vld [vmem:[%s1923_s5 + $0x90] sm:$0xff] }
  0x28   : > { %564 = vmatpush.msrb.mxu0 %v1202_v37  ;;  %598 = vmatpush.msrb.mxu1 %v1212_v38  ;;  %v742_v37 = vld [vmem:[%s1922_s4 + $0x18] sm:$0xff]  ;;  %v979_v19 = vld [vmem:[%s1925_s7 + $0x20] sm:$0xff] }
  0x29   : > { %v777_v38 = vld [vmem:[%s1923_s5 + $0x18] sm:$0xff] }
  0x2a   : > { %565 = vmatpush.msrb.mxu0 %v1201_v39  ;;  %599 = vmatpush.msrb.mxu1 %v1211_v40  ;;  %v741_v39 = vld [vmem:[%s1922_s4 + $0x10] sm:$0xff] }
  0x2b   : > { %v776_v40 = vld [vmem:[%s1923_s5 + $0x10] sm:$0xff] }
  0x2c   : > { %566 = vmatpush.msrb.mxu0 %v1200_v41  ;;  %600 = vmatpush.msrb.mxu1 %v1210_v42  ;;  %v682_v41 = vadd.s32 4294967295, %v622_v2  ;;  %v740_v42 = vld [vmem:[%s1922_s4 + $0x8] sm:$0xff] }
  0x2d   : > { %1172 = vmatmul.msk.f32.gmra.mxu0 %vm395_vm1, %v385_v29 }
  0x2e   : > { %567 = vmatpush.msrb.mxu0 %v1199_v43  ;;  %601 = vmatpush.msrb.mxu1 %v1209_v44  ;;  %v775_v43 = vld [vmem:[%s1923_s5 + $0x8] sm:$0xff]  ;;  %v685_v44 = vadd.s32 1, %v622_v2  ;;  %vm683_vm6 = vcmp.eq.s32.totalorder %v1655_v18, %v682_v41  ;;  %v1234_v2 = vld [vmem:[%s1923_s5 + $0x40] sm:$0xff]  ;;  %v1039_v41 = vld [vmem:[%s1925_s7 + $0x78] sm:$0xff] }
  0x2f   : > { %1174 = vmatmul.msk.f32.gmra.mxu1 %vm395_vm1, %v385_v29  ;;  %1184 = vmatmul.msk.f32.gmra.mxu2 %vm395_vm1, %v474_v33  ;;  %v1661_v29 = vsel %vm626_vm3, 1.0, %v1374_v28 }
  0x30   : > { %1194 = vmatmul.msk.f32.gmra.mxu3 %vm395_vm1, %v474_v33  ;;  %568 = vmatpush.msrb.mxu0 %v1198_v45  ;;  %v744_v33 = vld [vmem:[%s1922_s4 + $0x28] sm:$0xff]  ;;  %v739_v45 = vld [vmem:[%s1922_s4] sm:$0xff]  ;;  %vm686_vm7 = vcmp.eq.s32.totalorder %v1655_v18, %v685_v44  ;;  %v1038_v44 = vld [vmem:[%s1925_s7 + $0x70] sm:$0xff] }
  0x31   : > { %602 = vmatpush.msrb.mxu1 %v1208_v46  ;;  %v774_v46 = vld [vmem:[%s1923_s5] sm:$0xff]  ;;  %v980_v18 = vld [vmem:[%s1925_s7 + $0x28] sm:$0xff] }
  0x32   : > { %569 = vmatpush.msrb.mxu0 %v1197_v47  ;;  %v1247_v47 = vld [vmem:[%s1922_s4 + $0xa0] sm:$0xff] }
  0x33   : > { %603 = vmatpush.msrb.mxu1 %v1207_v48  ;;  %v1255_v48 = vld [vmem:[%s1923_s5 + $0xa0] sm:$0xff] }
  0x34   : > { %570 = vmatpush.msrb.mxu0 %v1196_v51 }
  0x35   : > { %604 = vmatpush.msrb.mxu1 %v1206_v52 }
  0x36   : > { %571 = vmatpush.msrb.mxu0 %v1195_v53 }
  0x37   : > { %605 = vmatpush.msrb.mxu1 %v1205_v54  ;;  %1203 = vmatmul.msk.f32.vlgmr.msrb.gmra.mxu0 %vm395_vm1, %v551_v55  ;;  %v684_v54 = vsel %vm683_vm6, 1.0, %v1374_v28 }
  0x38   : > { %1213 = vmatmul.msk.f32.vlgmr.msrb.gmra.mxu1 %vm395_vm1, %v551_v55  ;;  %759 = vmatpush.msra.mxu0 %v745_v31  ;;  %v1239_v55 = vld [vmem:[%s1923_s5 + $0x68] sm:$0xff] }
  0x39   : > { %790 = vmatpush.msra.mxu1 %v780_v32 }
  0x3a   : > { %760 = vmatpush.msra.mxu0 %v744_v33 }
  0x3b   : > { %791 = vmatpush.msra.mxu1 %v779_v34 }
  0x3c   : > { %761 = vmatpush.msra.mxu0 %v743_v35 }
  0x3d   : > { %792 = vmatpush.msra.mxu1 %v778_v36 }
  0x3e   : > { %762 = vmatpush.msra.mxu0 %v742_v37 }
  0x3f   : > { %1204 = vmatmul.msk.f32.gmra.mxu0 %vm395_vm1, %v550_v50  ;;  %793 = vmatpush.msra.mxu1 %v777_v38 }
  0x40   : > { %1214 = vmatmul.msk.f32.gmra.mxu1 %vm395_vm1, %v550_v50  ;;  %763 = vmatpush.msra.mxu0 %v741_v39  ;;  %v1254_v50 = vld [vmem:[%s1923_s5 + $0x98] sm:$0xff]  ;;  %v1041_v39 = vld [vmem:[%s1925_s7 + $0x88] sm:$0xff] }
  0x41   : > { %794 = vmatpush.msra.mxu1 %v776_v40  ;;  %v1040_v40 = vld [vmem:[%s1925_s7 + $0x80] sm:$0xff] }
  0x42   : > { %764 = vmatpush.msra.mxu0 %v740_v42  ;;  %v978_v42 = vld [vmem:[%s1925_s7 + $0x18] sm:$0xff] }
  0x43   : > { %795 = vmatpush.msra.mxu1 %v775_v43  ;;  %v1009_v43 = vld [vmem:[%s1925_s7 + $0x48] sm:$0xff] }
  0x44   : > { %765 = vmatpush.msra.mxu0 %v739_v45  ;;  %v976_v45 = vld [vmem:[%s1925_s7 + $0x8] sm:$0xff] }
  0x45   : > { %796 = vmatpush.msra.mxu1 %v774_v46  ;;  %v1008_v46 = vld [vmem:[%s1925_s7 + $0x40] sm:$0xff] }
  0x46   : > { %882 = vmatpush.msrb.mxu0 %v1247_v47  ;;  %v1037_v47 = vld [vmem:[%s1925_s7 + $0x68] sm:$0xff] }
  0x47   : > { %911 = vmatpush.msrb.mxu1 %v1255_v48  ;;  %v975_v48 = vld [vmem:[%s1925_s7] sm:$0xff] }
  0x48   : > { %883 = vmatpush.msrb.mxu0 %v1246_v49  ;;  %v1007_v49 = vld [vmem:[%s1925_s7 + $0x38] sm:$0xff] }
  0x49   : > { %912 = vmatpush.msrb.mxu1 %v1254_v50  ;;  %v1036_v50 = vld [vmem:[%s1925_s7 + $0x60] sm:$0xff] }
  0x4b   : > { %913 = vmatpush.msrb.mxu1 %v1253_v7 }
  0xa2   : > { %v419_v56 = vpop.f32.mrf.mxu0 }
  0xa3   : > { %v455_v57 = vpop.f32.mrf.mxu1  ;;  %v428_v3 = vadd.f32 %v1308_v63, %v419_v56  ;;  %v1231_v56 = vld [vmem:[%s1922_s4 + $0x68] sm:$0xff] }
  0xa4   : > { %v461_v4 = vadd.f32 %v1308_v63, %v455_v57  ;;  %v687_v57 = vsel %vm686_vm7, 1.0, %v1374_v28 }
  0xaa   : > { %v422_v58 = vpop.f32.mrf.mxu0  ;;  %v497_v60 = vpop.f32.mrf.mxu2 }
  0xab   : > { %v531_v61 = vpop.f32.mrf.mxu3  ;;  %v503_v8 = vadd.f32 %v497_v60, %v428_v3  ;;  %v429_v10 = vadd.f32 %v1308_v63, %v422_v58  ;;  %v1238_v58 = vld [vmem:[%s1923_s5 + $0x60] sm:$0xff]  ;;  %v1237_v60 = vld [vmem:[%s1923_s5 + $0x58] sm:$0xff] }
  0xac   : > { %v458_v59 = vpop.f32.mrf.mxu1  ;;  %v537_v9 = vadd.f32 %v531_v61, %v461_v4  ;;  %v1229_v61 = vld [vmem:[%s1922_s4 + $0x58] sm:$0xff]  ;;  %v1226_v3 = vld [vmem:[%s1922_s4 + $0x40] sm:$0xff] }
  0xad   : > { %v462_v11 = vadd.f32 %v1308_v63, %v458_v59  ;;  %v1230_v59 = vld [vmem:[%s1922_s4 + $0x60] sm:$0xff]  ;;  %v1228_v63 = vld [vmem:[%s1922_s4 + $0x50] sm:$0xff]  ;;  %v1233_v4 = vld [vmem:[%s1923_s5 + $0x38] sm:$0xff] }
  0xb2   : > { %v500_v5 = vpop.f32.mrf.mxu2 }
  0xb3   : > { %v534_v6 = vpop.f32.mrf.mxu3  ;;  %v504_v12 = vadd.f32 %v500_v5, %v429_v10  ;;  %v1225_v5 = vld [vmem:[%s1922_s4 + $0x38] sm:$0xff]  ;;  %v1243_v10 = vld [vmem:[%s1922_s4 + $0x80] sm:$0xff] }
  0xb4   : > { %v573_v0 = vpop.f32.mrf.mxu0  ;;  %v538_v13 = vadd.f32 %v534_v6, %v462_v11  ;;  %v1245_v6 = vld [vmem:[%s1922_s4 + $0x90] sm:$0xff]  ;;  %v1251_v11 = vld [vmem:[%s1923_s5 + $0x80] sm:$0xff] }
  0xb5   : > { %v607_v1 = vpop.f32.mrf.mxu1  ;;  %v579_v14 = vadd.f32 %v573_v0, %v503_v8  ;;  %v1235_v0 = vld [vmem:[%s1923_s5 + $0x48] sm:$0xff]  ;;  %884 = vmatpush.msrb.mxu0 %v1245_v6 }
  0xb6   : > { %v613_v15 = vadd.f32 %v607_v1, %v537_v9  ;;  %v1227_v1 = vld [vmem:[%s1922_s4 + $0x48] sm:$0xff] }
  0xb7   : > { %v615_v22 = vmax.f32 %v579_v14, 0.0  ;;  %v1244_v8 = vld [vmem:[%s1922_s4 + $0x88] sm:$0xff]  ;;  %v1241_v14 = vld [vmem:[%s1922_s4 + $0x70] sm:$0xff] }
  0xb8   : > { %v617_v23 = vmax.f32 %v613_v15, 0.0  ;;  %v1252_v9 = vld [vmem:[%s1923_s5 + $0x88] sm:$0xff]  ;;  %885 = vmatpush.msrb.mxu0 %v1244_v8  ;;  %v1249_v15 = vld [vmem:[%s1923_s5 + $0x70] sm:$0xff] }
  0xb9   : > { %914 = vmatpush.msrb.mxu1 %v1252_v9 }
  0xba   : > { %v619_v27 = vmax.f32 %v615_v22, %v617_v23  ;;  %886 = vmatpush.msrb.mxu0 %v1243_v10 }
  0xbb   : > { %915 = vmatpush.msrb.mxu1 %v1251_v11 }
  0xbc   : > { %v576_v16 = vpop.f32.mrf.mxu0 }
  0xbd   : > { %v610_v17 = vpop.f32.mrf.mxu1  ;;  %v580_v20 = vadd.f32 %v576_v16, %v504_v12  ;;  %v1242_v12 = vld [vmem:[%s1922_s4 + $0x78] sm:$0xff] }
  0xbe   : > { %v614_v21 = vadd.f32 %v610_v17, %v538_v13  ;;  %v1250_v13 = vld [vmem:[%s1923_s5 + $0x78] sm:$0xff]  ;;  %887 = vmatpush.msrb.mxu0 %v1242_v12 }
  0xbf   : > { %v616_v24 = vmax.f32 %v580_v20, 0.0  ;;  %916 = vmatpush.msrb.mxu1 %v1250_v13  ;;  %v1011_v20 = vld [vmem:[%s1925_s7 + $0x58] sm:$0xff] }
  0xc0   : > { %v618_v25 = vmax.f32 %v614_v21, 0.0  ;;  %888 = vmatpush.msrb.mxu0 %v1241_v14  ;;  %v1309_v21 = vld [vmem:[%s1924_s6] ss:$0 sm:$0xff] }
  0xc1   : > { %917 = vmatpush.msrb.mxu1 %v1249_v15 }
  0xc2   : > { %v620_v26 = vmax.f32 %v616_v24, %v618_v25 }
  0xc4   : > { %1215 = vmatpush.msk.msrb.mxu2 %vm548_vm2, %v620_v26  ;;  %1217 = vmatpush.msk.msrb.mxu3 %vm548_vm2, %v620_v26 }
  0xc6   : > { %653 = vmatpush.msrb.mxu2 %v619_v27  ;;  %676 = vmatpush.msrb.mxu3 %v619_v27 }
  0xc7   : > { %1216 = vmatmul.msk.f32.vlgmr.msrb.gmra.mxu2 %vm631_vm5, %v1661_v29  ;;  %1218 = vmatmul.msk.f32.vlgmr.msrb.gmra.mxu3 %vm631_vm5, %v1663_v30 }
 0x14a   : > { %v655_v51 = vpop.f32.mrf.mxu2  ;;  %v678_v52 = vpop.f32.mrf.mxu3 }
 0x14b   : > { %v681_v53 = vmax.f32 %v655_v51, %v678_v52  ;;  %v1006_v51 = vld [vmem:[%s1925_s7 + $0x30] sm:$0xff] }
 0x14d   : > { %1219 = vmatpush.msk.msra.mxu2 %vm472_vm0, %v681_v53  ;;  %1221 = vmatpush.msk.msra.mxu3 %vm472_vm0, %v681_v53 }
 0x14e   : > { %1220 = vmatmul.msk.f32.vlgmr.msra.gmra.mxu2 %vm688_vm8, %v684_v54  ;;  %1222 = vmatmul.msk.f32.vlgmr.msra.gmra.mxu3 %vm688_vm8, %v687_v57  ;;  %v1069_v57 = vld [vmem:[%s1927_s9 + $0x18] sm:$0xff] }
 0x14f   : > { %850 = vmatpush.msrb.mxu3 %v1239_v55  ;;  %821 = vmatpush.msrb.mxu2 %v1231_v56 }
 0x151   : > { %851 = vmatpush.msrb.mxu3 %v1238_v58  ;;  %822 = vmatpush.msrb.mxu2 %v1230_v59  ;;  %v1068_v58 = vld [vmem:[%s1927_s9 + $0x10] sm:$0xff]  ;;  %v1067_v59 = vld [vmem:[%s1927_s9 + $0x8] sm:$0xff] }
 0x153   : > { %852 = vmatpush.msrb.mxu3 %v1237_v60  ;;  %823 = vmatpush.msrb.mxu2 %v1229_v61  ;;  %v1066_v60 = vld [vmem:[%s1927_s9] sm:$0xff] }
 0x154   : > { %v974_v61 = vld [vmem:[%s1926_s8] sm:$0x1] }
 0x155   : > { %853 = vmatpush.msrb.mxu3 %v1236_v62  ;;  %824 = vmatpush.msrb.mxu2 %v1228_v63 }
 0x157   : > { %854 = vmatpush.msrb.mxu3 %v1235_v0  ;;  %825 = vmatpush.msrb.mxu2 %v1227_v1 }
 0x159   : > { %855 = vmatpush.msrb.mxu3 %v1234_v2  ;;  %826 = vmatpush.msrb.mxu2 %v1226_v3 }
 0x15b   : > { %856 = vmatpush.msrb.mxu3 %v1233_v4  ;;  %827 = vmatpush.msrb.mxu2 %v1225_v5  ;;  %v1070_v4 = vld [vmem:[%s1928_s10] sm:$0x1] }
 0x15c   : > { %1240 = vmatmul.msk.f32.vlgmr.msrb.gmra.mxu3 %vm746_vm9, %v681_v53  ;;  %1232 = vmatmul.msk.f32.vlgmr.msrb.gmra.mxu2 %vm746_vm9, %v681_v53 }
 0x1d1   : > { %v712_v16 = vpop.f32.mrf.mxu2  ;;  %v735_v17 = vpop.f32.mrf.mxu3 }
 0x1d2   : > { %1223 = vmatmul.msk.f32.vlgmr.msra.gmra.mxu0 %vm746_vm9, %v712_v16  ;;  %1224 = vmatmul.msk.f32.vlgmr.msra.gmra.mxu1 %vm746_vm9, %v712_v16 }
 0x1d3   : > { %995 = vmatpush.msra.mxu0 %v980_v18  ;;  %1025 = vmatpush.msra.mxu1 %v1011_v20 }
 0x1d5   : > { %996 = vmatpush.msra.mxu0 %v979_v19 }
 0x1d7   : > { %997 = vmatpush.msra.mxu0 %v978_v42 }
 0x1da   : > { %1248 = vmatmul.msk.f32.vlgmr.msrb.gmra.mxu0 %vm746_vm9, %v735_v17  ;;  %1256 = vmatmul.msk.f32.vlgmr.msrb.gmra.mxu1 %vm746_vm9, %v735_v17 }
 0x1df   : > { %v829_v26 = vpop.f32.mrf.mxu2  ;;  %v858_v27 = vpop.f32.mrf.mxu3 }
 0x24f   : > { %v767_v22 = vpop.f32.mrf.mxu0  ;;  %v798_v23 = vpop.f32.mrf.mxu1 }
 0x250   : > { %v773_v24 = vadd.f32 %v1309_v21, %v767_v22  ;;  %v801_v25 = vadd.f32 %v1309_v21, %v798_v23 }
 0x252   : > { %v832_v28 = vadd.f32 %v829_v26, %v773_v24  ;;  %v861_v31 = vadd.f32 %v858_v27, %v801_v25 }
 0x257   : > { %v890_v32 = vpop.f32.mrf.mxu0  ;;  %v919_v33 = vpop.f32.mrf.mxu1 }
 0x258   : > { %v893_v34 = vadd.f32 %v890_v32, %v832_v28  ;;  %v922_v35 = vadd.f32 %v919_v33, %v861_v31 }
 0x25a   : > { %v923_v36 = vmax.f32 %v893_v34, 0.0  ;;  %v924_v37 = vmax.f32 %v922_v35, 0.0 }
 0x25c   : > { %v925_v38 = vmax.f32 %v923_v36, %v924_v37 }
 0x25e   : > { %1257 = vmatpush.msk.msra.mxu2 %vm472_vm0, %v925_v38  ;;  %1259 = vmatpush.msk.msra.mxu3 %vm472_vm0, %v925_v38 }
 0x25f   : > { %1258 = vmatmul.msk.f32.vlgmr.msra.gmra.mxu2 %vm688_vm8, %v1661_v29  ;;  %1260 = vmatmul.msk.f32.vlgmr.msra.gmra.mxu3 %vm688_vm8, %v1663_v30  ;;  %v1010_v29 = vld [vmem:[%s1925_s7 + $0x50] sm:$0xff] }
 0x260   : > { %1055 = vmatpush.msrb.mxu2 %v1041_v39  ;;  %1026 = vmatpush.msra.mxu1 %v1010_v29  ;;  %v977_v30 = vld [vmem:[%s1925_s7 + $0x10] sm:$0xff] }
 0x261   : > { %998 = vmatpush.msra.mxu0 %v977_v30  ;;  %1087 = vmatpush.msrb.mxu3 %v1069_v57 }
 0x262   : > { %1056 = vmatpush.msrb.mxu2 %v1040_v40  ;;  %1027 = vmatpush.msra.mxu1 %v1009_v43 }
 0x263   : > { %999 = vmatpush.msra.mxu0 %v976_v45  ;;  %1088 = vmatpush.msrb.mxu3 %v1068_v58 }
 0x264   : > { %1057 = vmatpush.msrb.mxu2 %v1039_v41  ;;  %1028 = vmatpush.msra.mxu1 %v1008_v46 }
 0x265   : > { %1000 = vmatpush.msra.mxu0 %v975_v48  ;;  %1089 = vmatpush.msrb.mxu3 %v1067_v59 }
 0x266   : > { %1058 = vmatpush.msrb.mxu2 %v1038_v44  ;;  %1029 = vmatpush.msra.mxu1 %v1007_v49 }
 0x267   : > { %1090 = vmatpush.msrb.mxu3 %v1066_v60 }
 0x268   : > { %1059 = vmatpush.msrb.mxu2 %v1037_v47  ;;  %1030 = vmatpush.msra.mxu1 %v1006_v51 }
 0x26a   : > { %1060 = vmatpush.msrb.mxu2 %v1036_v50 }
 0x2e2   : > { %v948_v52 = vpop.f32.mrf.mxu2  ;;  %v970_v53 = vpop.f32.mrf.mxu3 }
 0x2e3   : > { %v973_v54 = vmax.f32 %v948_v52, %v970_v53 }
 0x2e5   : > { %v1012_v55 = vrot.slane %v973_v54, 1  ;;  %v1042_v56 = vrot.slane %v973_v54, 2  ;;  %1261 = vmatmul.msk.f32.vlgmr.msra.gmra.mxu0 %vm981_vm10, %v973_v54 }
 0x2e7   : > { %1263 = vmatmul.msk.f32.vlgmr.msrb.gmra.mxu2 %vm981_vm10, %v1042_v56  ;;  %1262 = vmatmul.msk.f32.vlgmr.msra.gmra.mxu1 %vm981_vm10, %v1012_v55 }
 0x362   : > { %v1002_v62 = vpop.f32.mrf.mxu0 }
 0x363   : > { %v1005_v63 = vadd.f32 %v1002_v62, %v974_v61 }
 0x364   : > { %v1032_v0 = vpop.f32.mrf.mxu1 }
 0x365   : > { %v1035_v1 = vadd.f32 %v1032_v0, %v1005_v63 }
 0x36a   : > { %v1062_v2 = vpop.f32.mrf.mxu2 }
 0x36b   : > { %v1065_v3 = vadd.f32 %v1062_v2, %v1035_v1 }
 0x36d   : > { %1264 = vmatmul.msk.f32.vlgmr.msrb.gmra.mxu3 %vm1071_vm11, %v1065_v3 }
 0x3f0   : > { %v1092_v5 = vpop.f32.mrf.mxu3 }
 0x3f1   : > { %v1093_v6 = vadd.f32 %v1092_v5, %v1070_v4 }
 0x3f3   : > { %1096 = vst.msk [vmem:[%s378_s22] sm:$0x1] %vm1095_vm12, %v1093_v6 }
 0x3f4   : > { %1337 = shalt.err (!%p1334_p3)
}
 0x3f5   : > { %1268 = dma.vmem_to_hbm [thread:$0]  (%p1473_p5), %s1109_s29, 16, %s1111_s26, %s1098_s25  }
 0x3f6 PF: > { %p1274_p4 = scmp.ge.s32.totalorder %s1372_s20, 2  ;;  %s1122_s19 = sand.u32 1, %s1360_s17  }
 0x3f7   : > { %s1123_s24 = scalar_lea.sflag [#allocation3], %s1122_s19 }
 0x3f8   : > { %p1271_p7 = pnand %p1274_p4, %p1477_p6 }
 0x3fa   : > { %p1272_p8 = pneg %p1271_p7 }
 0x3fc   : > { %1355 = dma.done.wait (%p1272_p8), %s1123_s24, 16  }
 0x3fd   : > { %1357 = vsyncadd (%p1272_p8), %s1123_s24, 4294967280  ;;  %s1935_s22 = sld [smem:[#allocation5_spill]]  ;;  %p21_p9 = scmp.ge.s32.totalorder %s1460_s23, 4  }
 0x3fe   : > { %s1936_s19 = sld [smem:[#allocation6_spill]]  ;;  %s1937_s17 = smov %s1364_s18 }
 0x3ff   : > { %s1939_s20 = smov %s1460_s23  ;;  %23 = sbr.rel (!%p21_p9) target bundleno = 3 (0x3), region = 107 }
 0x403   : > { %s1938_s18 = smov %s1935_s22 }
 0x404   :  { %1128 = vsyncpa [#allocation3], 1 }
 0x405   :  { %1130 = vsyncpa [#allocation3 + $0x1], 1 }

</bundles_post_ra>
